<compile_context>
chip_gen: v5e
topology: v5e:2x2
jax: 0.10.0
libtpu: 0.0.40
codegen_flags: <defaults>
</compile_context>

<pallas_src>
import jax
import jax.numpy as jnp
from jax.experimental import pallas as pl
from jax.experimental.pallas import tpu as pltpu

LANE = 128


# -----------------------------------------------------------------------------
# Fused kernel: both DenseGCNConv heads in one pass, one matmul, one store.
# -----------------------------------------------------------------------------
def vgcn_kernel(x_ref, adj_ref, w_ref, b_ref, out_ref):
    n = adj_ref.shape[0]

    # A' = A with self-loops (diagonal forced to 1, as in DenseGCNConv).
    eye = (jax.lax.broadcasted_iota(jnp.int32, (n, n), 0)
           == jax.lax.broadcasted_iota(jnp.int32, (n, n), 1))
    adj = jnp.where(eye, 1.0, adj_ref[...])

    # Symmetric normalization without materializing D^{-1/2} A' D^{-1/2}:
    #   A_norm @ Z = D^{-1/2} * (A' @ (D^{-1/2} * Z))
    deg = jnp.sum(adj, axis=-1, keepdims=True)          # (N, 1)  XLU row-sum
    d_inv_sqrt = jax.lax.rsqrt(jnp.maximum(deg, 1.0))   # (N, 1)  EUP rsqrt

    ax = d_inv_sqrt * jnp.dot(adj, d_inv_sqrt * x_ref[...],
                              preferred_element_type=jnp.float32)   # (N, C_in)

    # Single fused head matmul: W = [w_mu | w_logstd | 0-pad] (C_in, 128).
    out = jnp.dot(ax, w_ref[...], preferred_element_type=jnp.float32) + b_ref[...]
    out_ref[...] = out.astype(out_ref.dtype)             # lane-dense (N, 128) store


# -----------------------------------------------------------------------------
# Wrapper: single gridless pallas_call, everything resident in VMEM.
# -----------------------------------------------------------------------------
def variational_linear_encoder(x, adj, w_mu, b_mu, w_logstd, b_logstd):
    n, c_in = x.shape
    c_out = w_mu.shape[1]
    c_fused = 2 * c_out
    c_pad = ((c_fused + LANE - 1) // LANE) * LANE        # pad fused lanes to 128

    # Fuse + zero-pad weights/bias so the kernel's output slab is lane-dense.
    w = jnp.zeros((c_in, c_pad), jnp.float32)
    w = w.at[:, :c_out].set(w_mu.astype(jnp.float32))
    w = w.at[:, c_out:c_fused].set(w_logstd.astype(jnp.float32))
    b = jnp.zeros((1, c_pad), jnp.float32)
    b = b.at[0, :c_out].set(b_mu.astype(jnp.float32))
    b = b.at[0, c_out:c_fused].set(b_logstd.astype(jnp.float32))

    vmem = pl.BlockSpec(memory_space=pltpu.MemorySpace.VMEM)

    out = pl.pallas_call(
        vgcn_kernel,
        out_shape=jax.ShapeDtypeStruct((n, c_pad), jnp.float32),
        in_specs=[vmem, vmem, vmem, vmem],
        out_specs=vmem,
    )(x.astype(jnp.float32), adj.astype(jnp.float32), w, b)

    return out[:, :c_out], out[:, c_out:c_fused]


# -----------------------------------------------------------------------------
# Pure-JAX reference (matches PyG DenseGCNConv forward) for validation.
# -----------------------------------------------------------------------------
def reference_forward(x, adj, w_mu, b_mu, w_logstd, b_logstd):
    n = x.shape[0]
    idx = jnp.arange(n)
    adj = adj.at[idx, idx].set(1.0)
    deg = jnp.maximum(adj.sum(-1), 1.0)
    dis = deg ** -0.5
    adj_norm = dis[:, None] * adj * dis[None, :]
    mu = adj_norm @ (x @ w_mu) + b_mu
    ls = adj_norm @ (x @ w_logstd) + b_logstd
    return mu, ls


if __name__ == "__main__":
    key = jax.random.PRNGKey(0)
    k_x, k_adj, k_wm, k_wl, k_bm, k_bl = jax.random.split(key, 6)

    num_nodes = 16
    in_channels = 8
    out_channels = 32

    x = jax.random.normal(k_x, (num_nodes, in_channels), jnp.float32)
    adj = (jax.random.uniform(k_adj, (num_nodes, num_nodes)) < 0.3).astype(jnp.float32)

    s = 1.0 / jnp.sqrt(in_channels)
    w_mu = jax.random.uniform(k_wm, (in_channels, out_channels), jnp.float32, -s, s)
    w_logstd = jax.random.uniform(k_wl, (in_channels, out_channels), jnp.float32, -s, s)
    b_mu = jax.random.uniform(k_bm, (out_channels,), jnp.float32, -s, s)
    b_logstd = jax.random.uniform(k_bl, (out_channels,), jnp.float32, -s, s)

    mu, logstd = variational_linear_encoder(x, adj, w_mu, b_mu, w_logstd, b_logstd)
    mu = jax.block_until_ready(mu)
    logstd = jax.block_until_ready(logstd)

    assert mu.shape == (num_nodes, out_channels), mu.shape
    assert logstd.shape == (num_nodes, out_channels), logstd.shape
    assert jnp.all(jnp.isfinite(mu)) and jnp.all(jnp.isfinite(logstd))

    mu_ref, ls_ref = reference_forward(x, adj, w_mu, b_mu, w_logstd, b_logstd)
    assert jnp.allclose(mu, mu_ref, atol=2e-4, rtol=2e-4)
    assert jnp.allclose(logstd, ls_ref, atol=2e-4, rtol=2e-4)

    print("KERNEL_OK")
</pallas_src>

<mosaic_0001>
module attributes {stable_mosaic.version = 11 : i64} {
  func.func @vgcn_kernel(%arg0: memref<16x8xf32, #tpu.memory_space<vmem>>, %arg1: memref<16x16xf32, #tpu.memory_space<vmem>>, %arg2: memref<8x128xf32, #tpu.memory_space<vmem>>, %arg3: memref<1x128xf32, #tpu.memory_space<vmem>>, %arg4: memref<16x128xf32, #tpu.memory_space<vmem>>) attributes {dimension_semantics = [], scalar_prefetch = 0 : i64, scratch_operands = 0 : i64, tpu.core_type = #tpu.core_type<tc>} {
    %0 = tpu.iota {dimensions = array<i32: 0>} : vector<16x16xi32>
    %1 = tpu.iota {dimensions = array<i32: 1>} : vector<16x16xi32>
    %2 = arith.cmpi eq, %0, %1 : vector<16x16xi32>
    %c0 = arith.constant 0 : index
    %c0_0 = arith.constant 0 : index
    %3 = vector.load %arg1[%c0, %c0_0] : memref<16x16xf32, #tpu.memory_space<vmem>>, vector<16x16xf32>
    %cst = arith.constant 1.000000e+00 : f32
    %4 = vector.broadcast %cst : f32 to vector<16x16xf32>
    %5 = arith.select %2, %4, %3 : vector<16x16xi1>, vector<16x16xf32>
    %cst_1 = arith.constant dense<0.000000e+00> : vector<16xf32>
    %6 = vector.multi_reduction <add>, %5, %cst_1 [1] : vector<16x16xf32> to vector<16xf32>
    %7 = vector.shape_cast %6 : vector<16xf32> to vector<16x1xf32>
    %cst_2 = arith.constant 1.000000e+00 : f32
    %8 = vector.broadcast %cst_2 : f32 to vector<16x1xf32>
    %9 = arith.maximumf %7, %8 : vector<16x1xf32>
    %10 = math.rsqrt %9 : vector<16x1xf32>
    %c0_3 = arith.constant 0 : index
    %c0_4 = arith.constant 0 : index
    %11 = vector.load %arg0[%c0_3, %c0_4] : memref<16x8xf32, #tpu.memory_space<vmem>>, vector<16x8xf32>
    %12 = vector.broadcast %10 : vector<16x1xf32> to vector<16x8xf32>
    %13 = arith.mulf %12, %11 : vector<16x8xf32>
    %cst_5 = arith.constant dense<0.000000e+00> : vector<16x8xf32>
    %14 = tpu.matmul %5, %13, %cst_5 {dimension_numbers = #tpu.dot_dimension_numbers<[1], [0], [0], [1], [0, 0, 1, 1], [], []>} : vector<16x16xf32>, vector<16x8xf32>, vector<16x8xf32> -> vector<16x8xf32>
    %15 = vector.broadcast %10 : vector<16x1xf32> to vector<16x8xf32>
    %16 = arith.mulf %15, %14 : vector<16x8xf32>
    %c0_6 = arith.constant 0 : index
    %c0_7 = arith.constant 0 : index
    %17 = vector.load %arg2[%c0_6, %c0_7] : memref<8x128xf32, #tpu.memory_space<vmem>>, vector<8x128xf32>
    %cst_8 = arith.constant dense<0.000000e+00> : vector<16x128xf32>
    %18 = tpu.matmul %16, %17, %cst_8 {dimension_numbers = #tpu.dot_dimension_numbers<[1], [0], [0], [1], [0, 0, 1, 1], [], []>} : vector<16x8xf32>, vector<8x128xf32>, vector<16x128xf32> -> vector<16x128xf32>
    %c0_9 = arith.constant 0 : index
    %c0_10 = arith.constant 0 : index
    %19 = vector.load %arg3[%c0_9, %c0_10] : memref<1x128xf32, #tpu.memory_space<vmem>>, vector<1x128xf32>
    %20 = vector.broadcast %19 : vector<1x128xf32> to vector<16x128xf32>
    %21 = arith.addf %18, %20 : vector<16x128xf32>
    %c0_11 = arith.constant 0 : index
    %c0_12 = arith.constant 0 : index
    %22 = vector.load %arg4[%c0_11, %c0_12] : memref<16x128xf32, #tpu.memory_space<vmem>>, vector<16x128xf32>
    tpu.vector_store %arg4[%c0_11, %c0_12], %21 {strides = array<i32>} : memref<16x128xf32, #tpu.memory_space<vmem>>, vector<16x128xf32>,
    return
  }
}

</mosaic_0001>

<bundles_post_ra>
// kernel: tpu_custom_call.1
= control target key start
LH: loop header
LB: loop body
LE: loop exit
PB: predicated region body
PF: predicated region fallthrough
CT: control target
= control target key end

     0   :  { %v18_v0 = vlaneseq  ;;  %s242_s0 = inlined_call_operand.vmem [shape: f32[16,8], index: 0, kind: input, shape index: {}]   ;;  %s243_s1 = inlined_call_operand.vmem [shape: f32[16,16], index: 1, kind: input, shape index: {}]   ;;  %s244_s2 = inlined_call_operand.vmem [shape: f32[8,128], index: 2, kind: input, shape index: {}]   ;;  %s245_s3 = inlined_call_operand.vmem [shape: f32[1,128], index: 3, kind: input, shape index: {}]   ;;  %s246_s4 = inlined_call_operand.hbm [shape: f32[16,128], index: 4, kind: output, shape index: {}]  }
   0x1   :  { %9 = vsyncpa [#allocation3], 0  ;;  %v26_v4 = vld [vmem:[%s243_s1 + $0x8] sm:$0xff]  ;;  %vm29_vm0 = vcmask 130048   ;;  %v25_v7 = vld [vmem:[%s243_s1] sm:$0xff]  ;;  %vm98_vm9 = vcmask 64512  }
   0x2   :  { %v19_v1 = vshrl.u32 %v18_v0, 7  ;;  %v22_v2 = vand.u32 127, %v18_v0  ;;  %v59_v22 = vld [vmem:[%s242_s0 + $0x8] sm:$0xff]  ;;  %v58_v29 = vld [vmem:[%s242_s0] sm:$0xff]  ;;  %s189_s25 = smov [#allocation2]   ;;  %s136_s28 = sshll.u32 %s246_s4, 4  ;;  %s137_s28 = int_to_ptr.hbm [resolvable:$true] %s136_s28 }
   0x3   :  { %v93_v32 = vld [vmem:[%s244_s2] sm:$0xff]  ;;  %s134_s26 = sshll.u32 %s189_s25, 4  ;;  %s190_s29 = smov 128   ;;  %s135_s26 = int_to_ptr.vmem [resolvable:$true] %s134_s26 }
   0x4   :  { %v20_v3 = vadd.s32 8, %v19_v1  ;;  %vm23_vm2 = vcmp.eq.s32.totalorder %v19_v1, %v22_v2  ;;  %120 = vmatpush.msra.mxu1 %v93_v32  ;;  %154 = vmatpush.msra.mxu3 %v93_v32  ;;  %v158_v37 = vld [vmem:[%s245_s3] ss:$0 sm:$0xff]  ;;  %s191_s30 = smov 8  }
   0x5   :  { %v27_v8 = vsel %vm23_vm2, 1.0, %v25_v7 }
   0x6   :  { %vm24_vm1 = vcmp.eq.s32.totalorder %v20_v3, %v22_v2  ;;  %v30_v9 = vsel %vm29_vm0, %v27_v8, 0.0 }
   0x7   :  { %v28_v5 = vsel %vm24_vm1, 1.0, %v26_v4 }
   0x8   :  { %v33_v6 = vsel %vm29_vm0, %v28_v5, 0.0 }
   0x9   :  { %34 = vadd.xlane.f32.xlu0 %v33_v6 }
  0x11   :  { %31 = vadd.xlane.f32.xlu0 %v30_v9 }
  0x7c   :  { %v35_v10 = vpop.xlane.xlu0 %34 }
  0x7d   :  { %v37_v11 = vmax.f32 %v35_v10, 1.0 }
  0x7f   :  { %159 = vrsqrt.f32 %v37_v11  ;;  %vm54_vm4 = vweird.f32 %v37_v11 }
  0x84   :  { %v32_v12 = vpop.xlane.xlu0 %31 }
  0x85   :  { %v160_v13 = vpop.eup %159  ;;  %v36_v14 = vmax.f32 %v32_v12, 1.0 }
  0x86   :  { %v49_v15 = vmul.f32 %v160_v13, %v37_v11  ;;  %vm55_vm3 = vweird.f32 %v160_v13 }
  0x87   :  { %161 = vrsqrt.f32 %v36_v14  ;;  %vm56_vm5 = vmor %vm54_vm4, %vm55_vm3  ;;  %vm44_vm7 = vweird.f32 %v36_v14 }
  0x88   :  { %v50_v16 = vmul.f32 %v160_v13, %v49_v15 }
  0x8a   :  { %v51_v17 = vmul.f32 0.5, %v50_v16 }
  0x8c   :  { %v52_v18 = vsub.f32 1.5, %v51_v17 }
  0x8d   :  { %v162_v19 = vpop.eup %161 }
  0x8e   :  { %v39_v20 = vmul.f32 %v162_v19, %v36_v14  ;;  %v53_v21 = vmul.f32 %v160_v13, %v52_v18  ;;  %vm45_vm6 = vweird.f32 %v162_v19 }
  0x8f   :  { %vm46_vm8 = vmor %vm44_vm7, %vm45_vm6 }
  0x90   :  { %v40_v23 = vmul.f32 %v162_v19, %v39_v20  ;;  %v57_v24 = vsel %vm56_vm5, %v160_v13, %v53_v21 }
  0x91   :  { %v61_v25 = vmul.f32 %v59_v22, %v57_v24 }
  0x92   :  { %v41_v26 = vmul.f32 0.5, %v40_v23 }
  0x93   :  { %82 = vmatpush.msra.mxu0 %v61_v25  ;;  %152 = vmatpush.msra.mxu2 %v61_v25 }
  0x94   :  { %v42_v27 = vsub.f32 1.5, %v41_v26 }
  0x96   :  { %v43_v28 = vmul.f32 %v162_v19, %v42_v27 }
  0x98   :  { %v47_v30 = vsel %vm46_vm8, %v162_v19, %v43_v28 }
  0x99   :  { %v60_v31 = vmul.f32 %v58_v29, %v47_v30 }
  0x9b   :  { %83 = vmatpush.msra.mxu0 %v60_v31  ;;  %153 = vmatpush.msra.mxu2 %v60_v31 }
  0x9c   :  { %148 = vmatmul.msk.f32.vlgmr.msra.gmra.mxu0 %vm29_vm0, %v27_v8  ;;  %149 = vmatmul.msk.f32.vlgmr.msra.gmra.mxu2 %vm29_vm0, %v28_v5 }
 0x119   :  { %v85_v33 = vpop.f32.mrf.mxu0 }
 0x11a   :  { %v91_v34 = vmul.f32 %v85_v33, %v47_v30 }
 0x11c   :  { %150 = vmatmul.msk.f32.vlgmr.msra.gmra.mxu1 %vm98_vm9, %v91_v34 }
 0x11f   :  { %v88_v35 = vpop.f32.mrf.mxu2 }
 0x120   :  { %v92_v36 = vmul.f32 %v88_v35, %v57_v24 }
 0x122   :  { %151 = vmatmul.msk.f32.vlgmr.msra.gmra.mxu3 %vm98_vm9, %v92_v36 }
 0x199   :  { %v122_v38 = vpop.f32.mrf.mxu1 }
 0x19a   :  { %v123_v39 = vadd.f32 %v158_v37, %v122_v38 }
 0x19c   :  { %128 = vst [vmem:[#allocation2] sm:$0xff] %v123_v39 }
 0x1a5   :  { %v125_v40 = vpop.f32.mrf.mxu3 }
 0x1a6   :  { %v126_v41 = vadd.f32 %v158_v37, %v125_v40 }
 0x1a8   :  { %129 = vst [vmem:[#allocation2 + $0x8] sm:$0xff] %v126_v41 }
 0x1a9   :  { %142 = dma.vmem_to_hbm [thread:$0]  %s135_s26, 256, %s137_s28, [#allocation3], %s190_s29, %s190_s29, %s191_s30  }
 0x1aa   :  { %187 = dma.done.wait [#allocation3], 256  }
 0x1ab   :  { %188 = vsyncadd [#allocation3], 4294967040 }
 0x1ac   :  { %147 = vsyncpa [#allocation3], 1 }

</bundles_post_ra>
